<compile_context>
chip_gen: v7x
topology: tpu7x:2x2x1
jax: 0.10.0
libtpu: 0.0.40
codegen_flags: <defaults>
</compile_context>

<pallas_src>
import jax
import jax.numpy as jnp
from jax.experimental import pallas as pl
from jax.experimental.pallas import tpu as pltpu

# Packed-parameter slab layout (rows x cols, f32), zero padded:
#   rows  0:8 , cols 0:16 -> w1 window (real data rows 0:5, cols 0:10)
#   rows  8:24, cols 0:16 -> w2 window (real data rows 8:18, cols 0:10)
#   row  24   , cols 0:10 -> w3 as a row (fc3 weight, used on the VPU)
#   row  25   , cols 0:10 -> b1
#   row  26   , cols 0:10 -> b2
#   row  27   , col  0    -> b3 scalar
_SLAB_ROWS = 32
_SLAB_COLS = 128
_HID = 16  # lane width used for the hidden activations (real hidden dim = 10)


def ann_kernel(x_ref, p_ref, o_ref):
    x = x_ref[...]                                     # (TB, 5)
    tb = x.shape[0]

    # Pad the contraction dim 5 -> 8 so fc1 reads a full sublane-aligned
    # (8, _HID) weight window; the padded weight rows are zero, so this is a
    # mathematical no-op.
    x8 = jnp.concatenate([x, jnp.zeros((tb, 3), x.dtype)], axis=-1)   # (TB, 8)

    w1 = p_ref[0:8, 0:_HID]        # (8, 16)   rows 5:8 and cols 10:16 are zero
    w2 = p_ref[8:24, 0:_HID]       # (16, 16)  padded rows/cols are zero
    w3r = p_ref[24:25, 0:_HID]     # (1, 16)   fc3 weight as a row (cols 10:16 zero)
    b1 = p_ref[25:26, 0:_HID]      # (1, 16)
    b2 = p_ref[26:27, 0:_HID]      # (1, 16)
    b3 = p_ref[27:28, 0:1]         # (1, 1)

    # fc1 + tanh (MXU + EUP).  Padded output cols 10:16 = tanh(0 + 0) = 0.
    h1 = jnp.tanh(jnp.dot(x8, w1, preferred_element_type=jnp.float32) + b1)
    # fc2 + tanh (MXU + EUP).  Padded h1 cols hit zero w2 rows -> no effect.
    h2 = jnp.tanh(jnp.dot(h1, w2, preferred_element_type=jnp.float32) + b2)
    # fc3 (N=1): VPU multiply + lane reduce instead of a third MXU round trip.
    out = jnp.sum(h2 * w3r, axis=-1, keepdims=True) + b3              # (TB, 1)

    o_ref[...] = out.astype(o_ref.dtype)


def pack_params(w1, b1, w2, b2, w3, b3):
    """One-time packing of all parameters into a single lane-dense slab.

    Call ONCE at model init and reuse the returned slab for every forward call
    (the packing cost is hoisted out of the hot path).
    """
    p = jnp.zeros((_SLAB_ROWS, _SLAB_COLS), jnp.float32)
    p = p.at[0:5, 0:10].set(w1.astype(jnp.float32))        # rows 5:8 stay zero
    p = p.at[8:18, 0:10].set(w2.astype(jnp.float32))       # rows 18:24 stay zero
    p = p.at[24, 0:10].set(w3.astype(jnp.float32).reshape(-1))
    p = p.at[25, 0:10].set(b1.astype(jnp.float32).reshape(-1))
    p = p.at[26, 0:10].set(b2.astype(jnp.float32).reshape(-1))
    p = p.at[27, 0].set(b3.astype(jnp.float32).reshape(()))
    return p


def ann_forward(x, params, *, batch_tile=512):
    """Forward pass.  `params` is the pre-packed slab from pack_params()."""
    B = x.shape[0]
    # Pick a batch tile: a multiple of 8 that divides B (falls back to B).
    tb = min(B, batch_tile)
    if B % tb != 0:
        tb = B
    nb = B // tb

    flops = 2 * B * (5 * 10 + 10 * 10 + 10)
    transcendentals = 2 * B * 10
    bytes_accessed = (x.size + params.size + B) * 4

    return pl.pallas_call(
        ann_kernel,
        out_shape=jax.ShapeDtypeStruct((B, 1), jnp.float32),
        grid=(nb,),
        in_specs=[
            pl.BlockSpec((tb, x.shape[1]), lambda i: (i, 0)),
            pl.BlockSpec((_SLAB_ROWS, _SLAB_COLS), lambda i: (0, 0)),
        ],
        out_specs=pl.BlockSpec((tb, 1), lambda i: (i, 0)),
        compiler_params=pltpu.CompilerParams(
            dimension_semantics=("parallel",),
        ),
        cost_estimate=pl.CostEstimate(
            flops=flops,
            transcendentals=transcendentals,
            bytes_accessed=bytes_accessed,
        ),
    )(x, params)


def reference_forward(x, w1, b1, w2, b2, w3, b3):
    h1 = jnp.tanh(x @ w1 + b1)
    h2 = jnp.tanh(h1 @ w2 + b2)
    return h2 @ w3 + b3


if __name__ == "__main__":
    key = jax.random.PRNGKey(0)
    kx, k1, k2, k3, k4, k5, k6 = jax.random.split(key, 7)

    B = 8  # small batch
    x = jax.random.normal(kx, (B, 5), dtype=jnp.float32)

    # Parameters stored as (in_features, out_features) so the kernel computes
    # x @ W + b, equivalent to PyTorch's x @ W.T + b with W of shape (out, in).
    w1 = jax.random.normal(k1, (5, 10), dtype=jnp.float32) * 0.3
    b1 = jax.random.normal(k2, (10,), dtype=jnp.float32) * 0.1
    w2 = jax.random.normal(k3, (10, 10), dtype=jnp.float32) * 0.3
    b2 = jax.random.normal(k4, (10,), dtype=jnp.float32) * 0.1
    w3 = jax.random.normal(k5, (10, 1), dtype=jnp.float32) * 0.3
    b3 = jax.random.normal(k6, (1,), dtype=jnp.float32) * 0.1

    # Pack once (init-time); reuse for every forward call.
    params = pack_params(w1, b1, w2, b2, w3, b3)
    params = jax.block_until_ready(params)

    out = ann_forward(x, params)
    out = jax.block_until_ready(out)

    ref = reference_forward(x, w1, b1.reshape(1, -1), w2, b2.reshape(1, -1),
                            w3, b3.reshape(1, -1))
    assert out.shape == (B, 1)
    assert jnp.allclose(out, ref, atol=1e-5, rtol=1e-5)

    print("KERNEL_OK")
</pallas_src>

<mosaic_0001>
module attributes {stable_mosaic.version = 11 : i64} {
  func.func @ann_kernel(%arg0: i32, %arg1: memref<8x5xf32, #tpu.memory_space<vmem>>, %arg2: memref<32x128xf32, #tpu.memory_space<vmem>>, %arg3: memref<8x1xf32, #tpu.memory_space<vmem>>) attributes {dimension_semantics = [#tpu.dimension_semantics<parallel>], iteration_bounds = array<i64: 1>, scalar_prefetch = 0 : i64, scratch_operands = 0 : i64, tpu.core_type = #tpu.core_type<tc>, window_params = [{transform_indices = @transform_0, window_bounds = array<i64: 8, 5>}, {pipeline_mode = #tpu.pipeline_mode<synchronous>, transform_indices = @transform_1, window_bounds = array<i64: 32, 128>}, {transform_indices = @transform_2, window_bounds = array<i64: 8, 1>}]} {
    %c0 = arith.constant 0 : index
    %c0_0 = arith.constant 0 : index
    %0 = vector.load %arg1[%c0, %c0_0] : memref<8x5xf32, #tpu.memory_space<vmem>>, vector<8x5xf32>
    %cst = arith.constant 0.000000e+00 : f32
    %1 = vector.broadcast %cst : f32 to vector<8x3xf32>
    %2 = tpu.concatenate %0, %1 in 1 : vector<8x5xf32>, vector<8x3xf32> -> vector<8x8xf32>
    %c0_1 = arith.constant 0 : index
    %c0_2 = arith.constant 0 : index
    %3 = vector.load %arg2[%c0_1, %c0_2] : memref<32x128xf32, #tpu.memory_space<vmem>>, vector<8x16xf32>
    %c8 = arith.constant 8 : index
    %c0_3 = arith.constant 0 : index
    %4 = vector.load %arg2[%c8, %c0_3] : memref<32x128xf32, #tpu.memory_space<vmem>>, vector<16x16xf32>
    %c24 = arith.constant 24 : index
    %c0_4 = arith.constant 0 : index
    %5 = vector.load %arg2[%c24, %c0_4] : memref<32x128xf32, #tpu.memory_space<vmem>>, vector<1x16xf32>
    %c25 = arith.constant 25 : index
    %c0_5 = arith.constant 0 : index
    %6 = vector.load %arg2[%c25, %c0_5] : memref<32x128xf32, #tpu.memory_space<vmem>>, vector<1x16xf32>
    %c26 = arith.constant 26 : index
    %c0_6 = arith.constant 0 : index
    %7 = vector.load %arg2[%c26, %c0_6] : memref<32x128xf32, #tpu.memory_space<vmem>>, vector<1x16xf32>
    %c27 = arith.constant 27 : index
    %c0_7 = arith.constant 0 : index
    %8 = vector.load %arg2[%c27, %c0_7] : memref<32x128xf32, #tpu.memory_space<vmem>>, vector<1x1xf32>
    %cst_8 = arith.constant dense<0.000000e+00> : vector<8x16xf32>
    %9 = tpu.matmul %2, %3, %cst_8 {dimension_numbers = #tpu.dot_dimension_numbers<[1], [0], [0], [1], [0, 0, 1, 1], [], []>} : vector<8x8xf32>, vector<8x16xf32>, vector<8x16xf32> -> vector<8x16xf32>
    %10 = vector.broadcast %6 : vector<1x16xf32> to vector<8x16xf32>
    %11 = arith.addf %9, %10 : vector<8x16xf32>
    %12 = math.tanh %11 : vector<8x16xf32>
    %cst_9 = arith.constant dense<0.000000e+00> : vector<8x16xf32>
    %13 = tpu.matmul %12, %4, %cst_9 {dimension_numbers = #tpu.dot_dimension_numbers<[1], [0], [0], [1], [0, 0, 1, 1], [], []>} : vector<8x16xf32>, vector<16x16xf32>, vector<8x16xf32> -> vector<8x16xf32>
    %14 = vector.broadcast %7 : vector<1x16xf32> to vector<8x16xf32>
    %15 = arith.addf %13, %14 : vector<8x16xf32>
    %16 = math.tanh %15 : vector<8x16xf32>
    %17 = vector.broadcast %5 : vector<1x16xf32> to vector<8x16xf32>
    %18 = arith.mulf %16, %17 : vector<8x16xf32>
    %cst_10 = arith.constant dense<0.000000e+00> : vector<8xf32>
    %19 = vector.multi_reduction <add>, %18, %cst_10 [1] : vector<8x16xf32> to vector<8xf32>
    %20 = vector.shape_cast %19 : vector<8xf32> to vector<8x1xf32>
    %21 = vector.broadcast %8 : vector<1x1xf32> to vector<8x1xf32>
    %22 = arith.addf %20, %21 : vector<8x1xf32>
    %c0_11 = arith.constant 0 : index
    %c0_12 = arith.constant 0 : index
    %23 = vector.load %arg3[%c0_11, %c0_12] : memref<8x1xf32, #tpu.memory_space<vmem>>, vector<8x1xf32>
    tpu.vector_store %arg3[%c0_11, %c0_12], %22 {strides = array<i32>} : memref<8x1xf32, #tpu.memory_space<vmem>>, vector<8x1xf32>,
    return
  }
  func.func @transform_0(%arg0: i32) -> (i32, i32) {
    %c0_i32 = arith.constant 0 : i32
    %c0_i32_0 = arith.constant 0 : i32
    return %arg0, %c0_i32 : i32, i32
  }
  func.func @transform_1(%arg0: i32) -> (i32, i32) {
    %c0_i32 = arith.constant 0 : i32
    %c0_i32_0 = arith.constant 0 : i32
    %c0_i32_1 = arith.constant 0 : i32
    return %c0_i32, %c0_i32_0 : i32, i32
  }
  func.func @transform_2(%arg0: i32) -> (i32, i32) {
    %c0_i32 = arith.constant 0 : i32
    %c0_i32_0 = arith.constant 0 : i32
    return %arg0, %c0_i32 : i32, i32
  }
}

</mosaic_0001>

<bundles_post_ra>
// kernel: tpu_custom_call.1
= control target key start
LH: loop header
LB: loop body
LE: loop exit
PB: predicated region body
PF: predicated region fallthrough
CT: control target
= control target key end

     0   :  { %7 = vsyncpa [#allocation3], 0  ;;  %s367_s0 = inlined_call_operand.hbm [shape: f32[8,5], index: 0, kind: input, shape index: {}]   ;;  %s368_s1 = inlined_call_operand.hbm [shape: f32[32,128], index: 1, kind: input, shape index: {}]   ;;  %s369_s2 = inlined_call_operand.vmem [shape: f32[8,1], index: 2, kind: output, shape index: {}]  }
   0x1   :  { %8 = vsyncpa [#allocation5], 0  ;;  %s311_s9 = smov [#allocation2]   ;;  %s312_s11 = smov [#allocation4]  }
   0x2   :  { %s15_s10 = sshll.u32 %s311_s9, 4  ;;  %s24_s12 = sshll.u32 %s312_s11, 4  ;;  %s16_s10 = int_to_ptr.vmem [resolvable:$true] %s15_s10  ;;  %s333_s12 = int_to_ptr.vmem [resolvable:$true] %s24_s12 }
   0x3   :  { %s263_s15 = scalar_lea.hbm %s367_s0, 128 }
   0x4   :  { %p264_p0 = scmp.ne.s32.totalorder %s367_s0, %s263_s15  ;;  %p267_p1 = scmp.lt.u32.totalorder %s263_s15, %s367_s0 }
   0x6   :  { %p269_p2 = pnand %p267_p1, %p264_p0 }
   0x8   :  { %272 = shalt.err (!%p269_p2)
}
   0x9   :  { %s273_s20 = scalar_lea.vmem %s16_s10, 128  ;;  %p278_p4 = scmp.lt.s32.totalorder %s16_s10, %s16_s10 }
   0xa   :  { %p274_p3 = scmp.ne.s32.totalorder %s16_s10, %s273_s20  ;;  %p279_p5 = scmp.lt.s32.totalorder %s273_s20, %s273_s20 }
   0xc   :  { %p280_p6 = por %p279_p5, %p278_p4 }
   0xe   :  { %p281_p7 = pnand %p280_p6, %p274_p3 }
  0x10   :  { %284 = shalt.err (!%p281_p7)
}
  0x11   :  { %18 = dma.hbm_to_vmem [thread:$0]  %s367_s0, 128, %s16_s10, [#allocation3]  }
  0x12   :  { %s285_s25 = scalar_lea.hbm %s368_s1, 512 }
  0x13   :  { %p286_p8 = scmp.ne.s32.totalorder %s368_s1, %s285_s25  ;;  %p289_p9 = scmp.lt.u32.totalorder %s285_s25, %s368_s1 }
  0x15   :  { %p291_p10 = pnand %p289_p9, %p286_p8 }
  0x17   :  { %294 = shalt.err (!%p291_p10)
}
  0x18   :  { %s295_s30 = scalar_lea.vmem %s333_s12, 512  ;;  %p300_p12 = scmp.lt.s32.totalorder %s333_s12, %s333_s12 }
  0x19   :  { %p296_p11 = scmp.ne.s32.totalorder %s333_s12, %s295_s30  ;;  %p301_p13 = scmp.lt.s32.totalorder %s295_s30, %s295_s30 }
  0x1b   :  { %p302_p0 = por %p301_p13, %p300_p12 }
  0x1d   :  { %p303_p1 = pnand %p302_p0, %p296_p11 }
  0x1f   :  { %306 = shalt.err (!%p303_p1)
}
  0x20   :  { %s313_s0 = smov 128   ;;  %s314_s3 = smov 8  }
  0x21   :  { %30 = dma.hbm_to_vmem [thread:$0]  %s368_s1, 512, %s333_s12, [#allocation5], %s313_s0, %s313_s0, %s314_s3  }
  0x22   :  { %307 = dma.done.wait [#allocation3], 128  }
  0x23   :  { %308 = vsyncadd [#allocation3], 4294967168 }
  0x24   :  { %309 = dma.done.wait [#allocation5], 512  }
  0x25   :  { %310 = vsyncadd [#allocation5], 4294966784  ;;  %v315_v0 = vmov 0.0   ;;  %vm316_vm0 = vmmov 0   ;;  %vm38_vm1 = vcmask 39936   ;;  %vm51_vm2 = vcmask 64512  }
  0x26   :  { %237 = vmatprep.subr.mxu0 %v315_v0  ;;  %239 = vmatprep.mubr.msk.f32.mxu0 %vm316_vm0, %v315_v0  ;;  %v40_v1 = vld [vmem:[#allocation4] sm:$0xff]  ;;  %v37_v2 = vld [vmem:[#allocation2] sm:$0xff]  ;;  %v41_v4 = vld [vmem:[#allocation4 + $0x8] sm:$0xff]  ;;  %v317_v6 = vmov 0.0|0.0   ;;  %vm130_vm3 = vcmask 130048   ;;  %vm218_vm4 = vcmask 7168  }
  0x27   :  { %246 = vmatprep.mubr.msk.f32.mxu1 %vm316_vm0, %v315_v0  ;;  %238 = vmatpush3.msra.mxu0 %v40_v1  ;;  %v39_v3 = vsel %vm38_vm1, %v37_v2, 0.0  ;;  %v42_v5 = vld [vmem:[#allocation4 + $0x10] sm:$0xff]  ;;  %v226_v8 = vld [vmem:[#allocation4 + $0x19] ss:$0 sm:$0xff]  ;;  %v228_v13 = vld [vmem:[#allocation4 + $0x1a] ss:$0 sm:$0xff] }
  0x28   :  { %240 = vmatmul.mubr.msk.f32.vlgmr.msra.gmra.mrb[0].mxu0 %vm51_vm2, %v39_v3  ;;  %249 = vmatprep.subr.bf16.mxu1 %v317_v6  ;;  %v250_v7 = vpack.c.bf16 %v42_v5, %v41_v4  ;;  %v230_v17 = vld [vmem:[#allocation4 + $0x18] ss:$0 sm:$0xff]  ;;  %v231_v21 = vld [vmem:[#allocation4 + $0x1b] ss:$0 sm:$0xff] }
  0x2a   :  { %251 = vmatpush3.bf16.msra.mxu1 %v250_v7 }
  0xfb   :  { %v121_v9 = vpop.f32.mrb[0].mxu0 }
  0xfc   :  { %v122_v10 = vadd.f32 %v226_v8, %v121_v9  ;;  %v241_v11 = vpop.f32.mrb[1].mxu0 }
  0xfe   :  { %259 = vtanh.f32 %v122_v10 }
 0x108   :  { %v260_v12 = vpop.eup %259 }
 0x109   :  { %247 = vmatmul.mubr.msk.f32.vlgmr.msra.gmra.mrb[0].mxu1 %vm130_vm3, %v260_v12 }
 0x1dc   :  { %v200_v14 = vpop.f32.mrb[0].mxu1 }
 0x1dd   :  { %v201_v15 = vadd.f32 %v228_v13, %v200_v14  ;;  %v248_v16 = vpop.f32.mrb[1].mxu1 }
 0x1df   :  { %261 = vtanh.f32 %v201_v15 }
 0x1e9   :  { %v262_v18 = vpop.eup %261 }
 0x1ea   :  { %v209_v19 = vmul.f32 %v262_v18, %v230_v17 }
 0x1ec   :  { %v210_v20 = vsel %vm130_vm3, %v209_v19, 0.0 }
 0x1ed   :  { %211 = vadd.xlane.f32.xlu0 %v210_v20 }
 0x27a   :  { %v212_v22 = vpop.xlane.xlu0 %211 }
 0x27b   :  { %v217_v23 = vadd.f32 %v231_v21, %v212_v22 }
 0x27d   :  { %219 = vst.msk [vmem:[%s369_s2] sm:$0xff] %vm218_vm4, %v217_v23 }
 0x27e   :  { %224 = vsyncpa [#allocation3], 1 }
 0x27f   :  { %225 = vsyncpa [#allocation5], 1 }

</bundles_post_ra>
